<compile_context>
chip_gen: v6e
topology: v6e:2x2x1
jax: 0.10.0
libtpu: 0.0.40
codegen_flags: <defaults>
</compile_context>

<pallas_src>
import jax
import jax.numpy as jnp
from jax import lax
from jax.experimental import pallas as pl
from jax.experimental.pallas import tpu as pltpu


def _round_up(n, m):
    return ((n + m - 1) // m) * m


def _cdiv(a, b):
    return (a + b - 1) // b


def _mlp_kernel(ts_ref, pe_ref, w1_ref, b1_ref, w2_ref, b2_ref, o_ref, x_ref):
    # ts_ref: (Mp,) int32 SMEM (scalar prefetch)
    # pe_ref: (Tp, Lp) f32 VMEM resident      w1/w2: (Lp, Lp) bf16 resident
    # b1/b2:  (1, Lp) f32                      o_ref: (tm, Lp) f32
    # x_ref:  (tm, Lp) f32 VMEM scratch (gathered embeddings for this tile)
    tm = x_ref.shape[0]
    base = pl.program_id(0) * tm

    def gather_row(r, carry):
        idx = ts_ref[base + r]                                # scalar SMEM read
        x_ref[pl.ds(r, 1), :] = pe_ref[pl.ds(idx, 1), :]      # dynamic row copy
        return carry

    lax.fori_loop(0, tm, gather_row, 0)

    # bf16 MXU operands, f32 accumulation.
    x = x_ref[...].astype(jnp.bfloat16)
    h = jnp.dot(x, w1_ref[...], preferred_element_type=jnp.float32) + b1_ref[...]
    h = h * jax.nn.sigmoid(h)                                 # SiLU (EUP slot)
    out = jnp.dot(h.astype(jnp.bfloat16), w2_ref[...],
                  preferred_element_type=jnp.float32) + b2_ref[...]
    o_ref[...] = out.astype(o_ref.dtype)


def prepare_timestep_embedder_params(pe, w1, b1, w2, b2):
    """One-time prep:
       * nn.Linear (out,in) weights -> (in,out) layout, zero-padded to (Lp,Lp), bf16
       * biases -> (1, Lp) f32
       * pe table -> (Tp, Lp) f32, rows padded to a multiple of 8, cols to Lp
    """
    pe2 = jnp.asarray(pe)
    if pe2.ndim == 3:
        pe2 = pe2[0]                                          # (max_len, L)
    T, L = pe2.shape
    Lp = max(_round_up(L, 128), 128)
    Tp = max(_round_up(T, 8), 8)

    def pad_w(w):                                             # (out,in)->(in,out)
        wt = jnp.transpose(jnp.asarray(w, jnp.float32))
        return jnp.pad(wt, ((0, Lp - L), (0, Lp - L))).astype(jnp.bfloat16)

    def pad_b(b):
        return jnp.pad(jnp.asarray(b, jnp.float32), (0, Lp - L)).reshape(1, Lp)

    pe_p = jnp.pad(pe2.astype(jnp.float32), ((0, Tp - T), (0, Lp - L)))
    return dict(pe=pe_p, w1=pad_w(w1), b1=pad_b(b1), w2=pad_w(w2), b2=pad_b(b2),
                latent_dim=L, padded_dim=Lp, max_len=T, padded_len=Tp)


def timestep_embedder_forward(timesteps, params, *, tm_max=256):
    """
    timesteps: (N,) integer indices into the pe time axis
    params:    dict from prepare_timestep_embedder_params
    returns:   (N, latent_dim) f32 == Linear(SiLU(Linear(pe[0, timesteps, :])))
    """
    L, Lp = params["latent_dim"], params["padded_dim"]
    T, Tp = params["max_len"], params["padded_len"]
    N = int(timesteps.shape[0])

    # Row tiling: multiple of 8 sublanes, >=2 grid steps whenever N >= 16
    # (so v7x's second TensorCore gets work), over-pad by < tm rows only.
    tm = max(8, min(tm_max, _round_up(_cdiv(N, 2), 8)))
    num_tiles = _cdiv(N, tm)
    Mp = num_tiles * tm

    # Clamp (matches jnp.take semantics, prevents OOB VMEM reads) and pad.
    ts = jnp.clip(jnp.asarray(timesteps, jnp.int32), 0, T - 1)
    ts = jnp.pad(ts, (0, Mp - N))

    cost = pl.CostEstimate(
        flops=2 * 2 * Mp * Lp * Lp,                 # two (Mp,Lp)x(Lp,Lp) matmuls
        transcendentals=Mp * Lp,                    # sigmoid
        bytes_accessed=(Mp * 4 + Tp * Lp * 4 + 2 * Lp * Lp * 2
                        + 2 * Lp * 4 + Mp * Lp * 4),
    )

    # VMEM budget: single-buffered residents + double-buffered out tile + scratch.
    vmem_need = (2 * Lp * Lp * 2            # w1 + w2, bf16, Buffered(1)
                 + Tp * Lp * 4              # pe, f32, Buffered(1)
                 + 2 * Lp * 4               # biases
                 + 2 * tm * Lp * 4          # out tile double-buffer
                 + tm * Lp * 4)             # x scratch
    vmem_limit = min(max(2 * vmem_need, 8 * 1024 * 1024), 48 * 1024 * 1024)

    resident = dict(pipeline_mode=pl.Buffered(1))   # constant index_map inputs

    out = pl.pallas_call(
        _mlp_kernel,
        out_shape=jax.ShapeDtypeStruct((Mp, Lp), jnp.float32),
        grid_spec=pltpu.PrefetchScalarGridSpec(
            num_scalar_prefetch=1,
            grid=(num_tiles,),
            in_specs=[
                pl.BlockSpec((Tp, Lp), lambda i, ts: (0, 0), **resident),  # pe
                pl.BlockSpec((Lp, Lp), lambda i, ts: (0, 0), **resident),  # w1
                pl.BlockSpec((1, Lp), lambda i, ts: (0, 0), **resident),   # b1
                pl.BlockSpec((Lp, Lp), lambda i, ts: (0, 0), **resident),  # w2
                pl.BlockSpec((1, Lp), lambda i, ts: (0, 0), **resident),   # b2
            ],
            out_specs=pl.BlockSpec((tm, Lp), lambda i, ts: (i, 0)),
            scratch_shapes=[pltpu.VMEM((tm, Lp), jnp.float32)],
        ),
        compiler_params=pltpu.CompilerParams(
            dimension_semantics=("parallel",),       # megacore sharding on v7x
            vmem_limit_bytes=vmem_limit,
        ),
        cost_estimate=cost,
    )(ts, params["pe"], params["w1"], params["b1"], params["w2"], params["b2"])

    # Output kept f32 to match the PyTorch module; emit bf16 here if the
    # downstream consumer is bf16.
    return out[:N, :L]


def make_sinusoidal_pe(max_len, latent_dim):
    pos = jnp.arange(max_len, dtype=jnp.float32)[:, None]
    i = jnp.arange(0, latent_dim, 2, dtype=jnp.float32)
    div = jnp.exp(-jnp.log(10000.0) * i / latent_dim)
    ang = pos * div
    pe = jnp.zeros((max_len, latent_dim), jnp.float32)
    pe = pe.at[:, 0::2].set(jnp.sin(ang))
    pe = pe.at[:, 1::2].set(jnp.cos(ang))
    return pe[None]                                  # (1, max_len, latent_dim)


def init_linear(key, in_f, out_f):
    """nn.Linear default init: U(-1/sqrt(in), 1/sqrt(in)), PyTorch (out,in) layout."""
    kw, kb = jax.random.split(key)
    bound = 1.0 / jnp.sqrt(jnp.float32(in_f))
    w = jax.random.uniform(kw, (out_f, in_f), jnp.float32, -bound, bound)
    b = jax.random.uniform(kb, (out_f,), jnp.float32, -bound, bound)
    return w, b


if __name__ == "__main__":
    key = jax.random.PRNGKey(0)
    k1, k2, kt = jax.random.split(key, 3)

    LATENT_DIM, MAX_LEN, BATCH = 32, 16, 8

    pe = make_sinusoidal_pe(MAX_LEN, LATENT_DIM)
    w1, b1 = init_linear(k1, LATENT_DIM, LATENT_DIM)
    w2, b2 = init_linear(k2, LATENT_DIM, LATENT_DIM)
    params = prepare_timestep_embedder_params(pe, w1, b1, w2, b2)

    timesteps = jax.random.randint(kt, (BATCH,), 0, MAX_LEN, dtype=jnp.int32)

    out = jax.block_until_ready(timestep_embedder_forward(timesteps, params))

    # Reference (same semantics as the PyTorch module), full f32 math.
    emb = pe[0, timesteps, :]
    hp = jnp.dot(emb, w1.T, precision="highest") + b1
    h = hp * jax.nn.sigmoid(hp)
    ref = jnp.dot(h, w2.T, precision="highest") + b2

    assert out.shape == (BATCH, LATENT_DIM)
    # bf16 MXU operands (f32 accumulation) vs f32 reference -> relaxed tolerance.
    assert jnp.allclose(out, ref, atol=5e-2, rtol=5e-2), float(
        jnp.max(jnp.abs(out - ref))
    )

    print("KERNEL_OK")
</pallas_src>

<mosaic_0001>
module attributes {stable_mosaic.version = 11 : i64} {
  func.func @_mlp_kernel(%arg0: i32, %arg1: memref<8xi32, #tpu.memory_space<smem>>, %arg2: memref<16x128xf32, #tpu.memory_space<vmem>>, %arg3: memref<128x128xbf16, #tpu.memory_space<vmem>>, %arg4: memref<1x128xf32, #tpu.memory_space<vmem>>, %arg5: memref<128x128xbf16, #tpu.memory_space<vmem>>, %arg6: memref<1x128xf32, #tpu.memory_space<vmem>>, %arg7: memref<8x128xf32, #tpu.memory_space<vmem>>, %arg8: memref<8x128xf32, #tpu.memory_space<vmem>>) attributes {dimension_semantics = [#tpu.dimension_semantics<parallel>], iteration_bounds = array<i64: 1>, scalar_prefetch = 1 : i64, scratch_operands = 1 : i64, tpu.core_type = #tpu.core_type<tc>, window_params = [{pipeline_mode = #tpu.pipeline_mode<synchronous>, transform_indices = @transform_0, window_bounds = array<i64: 16, 128>}, {pipeline_mode = #tpu.pipeline_mode<synchronous>, transform_indices = @transform_1, window_bounds = array<i64: 128, 128>}, {pipeline_mode = #tpu.pipeline_mode<synchronous>, transform_indices = @transform_2, window_bounds = array<i64: 1, 128>}, {pipeline_mode = #tpu.pipeline_mode<synchronous>, transform_indices = @transform_3, window_bounds = array<i64: 128, 128>}, {pipeline_mode = #tpu.pipeline_mode<synchronous>, transform_indices = @transform_4, window_bounds = array<i64: 1, 128>}, {transform_indices = @transform_5, window_bounds = array<i64: 8, 128>}]} {
    %c8_i32 = arith.constant 8 : i32
    %0 = arith.muli %arg0, %c8_i32 : i32
    %c0_i32 = arith.constant 0 : i32
    %c8_i32_0 = arith.constant 8 : i32
    %1 = arith.addi %c0_i32, %c8_i32_0 : i32
    %c1_i32 = arith.constant 1 : i32
    scf.for %arg9 = %c0_i32 to %1 step %c1_i32  : i32 {
      %22 = arith.addi %0, %arg9 : i32
      %23 = arith.index_cast %22 : i32 to index
      %24 = memref.load %arg1[%23] : memref<8xi32, #tpu.memory_space<smem>>
      %25 = arith.index_cast %24 : i32 to index
      %c0_15 = arith.constant 0 : index
      %26 = vector.load %arg2[%25, %c0_15] : memref<16x128xf32, #tpu.memory_space<vmem>>, vector<1x128xf32>
      %27 = arith.index_cast %arg9 : i32 to index
      %c0_16 = arith.constant 0 : index
      %28 = vector.load %arg8[%27, %c0_16] : memref<8x128xf32, #tpu.memory_space<vmem>>, vector<1x128xf32>
      tpu.vector_store %arg8[%27, %c0_16], %26 {strides = array<i32>} : memref<8x128xf32, #tpu.memory_space<vmem>>, vector<1x128xf32>,
    }
    %c8_i32_1 = arith.constant 8 : i32
    %c0 = arith.constant 0 : index
    %c0_2 = arith.constant 0 : index
    %2 = vector.load %arg8[%c0, %c0_2] : memref<8x128xf32, #tpu.memory_space<vmem>>, vector<8x128xf32>
    %3 = arith.truncf %2 : vector<8x128xf32> to vector<8x128xbf16>
    %c0_3 = arith.constant 0 : index
    %c0_4 = arith.constant 0 : index
    %4 = vector.load %arg3[%c0_3, %c0_4] : memref<128x128xbf16, #tpu.memory_space<vmem>>, vector<128x128xbf16>
    %cst = arith.constant dense<0.000000e+00> : vector<8x128xf32>
    %5 = tpu.matmul %3, %4, %cst {dimension_numbers = #tpu.dot_dimension_numbers<[1], [0], [0], [1], [0, 0, 1, 1], [], []>} : vector<8x128xbf16>, vector<128x128xbf16>, vector<8x128xf32> -> vector<8x128xf32>
    %c0_5 = arith.constant 0 : index
    %c0_6 = arith.constant 0 : index
    %6 = vector.load %arg4[%c0_5, %c0_6] : memref<1x128xf32, #tpu.memory_space<vmem>>, vector<1x128xf32>
    %7 = vector.broadcast %6 : vector<1x128xf32> to vector<8x128xf32>
    %8 = arith.addf %5, %7 : vector<8x128xf32>
    %9 = arith.negf %8 : vector<8x128xf32>
    %10 = math.exp %9 : vector<8x128xf32>
    %cst_7 = arith.constant 1.000000e+00 : f32
    %11 = vector.broadcast %cst_7 : f32 to vector<8x128xf32>
    %12 = arith.addf %11, %10 : vector<8x128xf32>
    %13 = arith.divf %11, %12 : vector<8x128xf32>
    %14 = arith.mulf %8, %13 : vector<8x128xf32>
    %15 = arith.truncf %14 : vector<8x128xf32> to vector<8x128xbf16>
    %c0_8 = arith.constant 0 : index
    %c0_9 = arith.constant 0 : index
    %16 = vector.load %arg5[%c0_8, %c0_9] : memref<128x128xbf16, #tpu.memory_space<vmem>>, vector<128x128xbf16>
    %cst_10 = arith.constant dense<0.000000e+00> : vector<8x128xf32>
    %17 = tpu.matmul %15, %16, %cst_10 {dimension_numbers = #tpu.dot_dimension_numbers<[1], [0], [0], [1], [0, 0, 1, 1], [], []>} : vector<8x128xbf16>, vector<128x128xbf16>, vector<8x128xf32> -> vector<8x128xf32>
    %c0_11 = arith.constant 0 : index
    %c0_12 = arith.constant 0 : index
    %18 = vector.load %arg6[%c0_11, %c0_12] : memref<1x128xf32, #tpu.memory_space<vmem>>, vector<1x128xf32>
    %19 = vector.broadcast %18 : vector<1x128xf32> to vector<8x128xf32>
    %20 = arith.addf %17, %19 : vector<8x128xf32>
    %c0_13 = arith.constant 0 : index
    %c0_14 = arith.constant 0 : index
    %21 = vector.load %arg7[%c0_13, %c0_14] : memref<8x128xf32, #tpu.memory_space<vmem>>, vector<8x128xf32>
    tpu.vector_store %arg7[%c0_13, %c0_14], %20 {strides = array<i32>} : memref<8x128xf32, #tpu.memory_space<vmem>>, vector<8x128xf32>,
    return
  }
  func.func @transform_0(%arg0: i32, %arg1: memref<8xi32, #tpu.memory_space<smem>>) -> (i32, i32) {
    %c0_i32 = arith.constant 0 : i32
    %c0_i32_0 = arith.constant 0 : i32
    %c0_i32_1 = arith.constant 0 : i32
    return %c0_i32, %c0_i32_0 : i32, i32
  }
  func.func @transform_1(%arg0: i32, %arg1: memref<8xi32, #tpu.memory_space<smem>>) -> (i32, i32) {
    %c0_i32 = arith.constant 0 : i32
    %c0_i32_0 = arith.constant 0 : i32
    %c0_i32_1 = arith.constant 0 : i32
    return %c0_i32, %c0_i32_0 : i32, i32
  }
  func.func @transform_2(%arg0: i32, %arg1: memref<8xi32, #tpu.memory_space<smem>>) -> (i32, i32) {
    %c0_i32 = arith.constant 0 : i32
    %c0_i32_0 = arith.constant 0 : i32
    %c0_i32_1 = arith.constant 0 : i32
    return %c0_i32, %c0_i32_0 : i32, i32
  }
  func.func @transform_3(%arg0: i32, %arg1: memref<8xi32, #tpu.memory_space<smem>>) -> (i32, i32) {
    %c0_i32 = arith.constant 0 : i32
    %c0_i32_0 = arith.constant 0 : i32
    %c0_i32_1 = arith.constant 0 : i32
    return %c0_i32, %c0_i32_0 : i32, i32
  }
  func.func @transform_4(%arg0: i32, %arg1: memref<8xi32, #tpu.memory_space<smem>>) -> (i32, i32) {
    %c0_i32 = arith.constant 0 : i32
    %c0_i32_0 = arith.constant 0 : i32
    %c0_i32_1 = arith.constant 0 : i32
    return %c0_i32, %c0_i32_0 : i32, i32
  }
  func.func @transform_5(%arg0: i32, %arg1: memref<8xi32, #tpu.memory_space<smem>>) -> (i32, i32) {
    %c0_i32 = arith.constant 0 : i32
    %c0_i32_0 = arith.constant 0 : i32
    return %arg0, %c0_i32 : i32, i32
  }
}

</mosaic_0001>

<bundles_post_ra>
// kernel: tpu_custom_call.1
= control target key start
LH: loop header
LB: loop body
LE: loop exit
PB: predicated region body
PF: predicated region fallthrough
CT: control target
= control target key end

     0   :  { %s557_s21 = smov [#allocation4]   ;;  %s624_s0 = inlined_call_operand.hbm [shape: s32[8], index: 0, kind: input, shape index: {}]   ;;  %s625_s1 = inlined_call_operand.hbm [shape: f32[16,128], index: 1, kind: input, shape index: {}]   ;;  %s626_s2 = inlined_call_operand.hbm [shape: bf16[128,128], index: 2, kind: input, shape index: {}]   ;;  %s627_s3 = inlined_call_operand.vmem [shape: f32[1,128], index: 3, kind: input, shape index: {}]   ;;  %s628_s4 = inlined_call_operand.hbm [shape: bf16[128,128], index: 4, kind: input, shape index: {}]   ;;  %s629_s5 = inlined_call_operand.vmem [shape: f32[1,128], index: 5, kind: input, shape index: {}]   ;;  %s630_s6 = inlined_call_operand.hbm [shape: f32[8,128], index: 6, kind: output, shape index: {}]  }
   0x1   :  { %12 = dma.hbm_to_smem %s624_s0, 16, %s557_s21, [#allocation3] }
   0x2   :  { %545 = dma.done.wait [#allocation3], 16 }
   0x3   :  { %546 = vsyncadd [#allocation3], 4294967280 }
   0x4   :  { %14 = sfence }
   0x5   :  { %15 = vsyncpa [#allocation6], 0 }
   0x6   :  { %16 = vsyncpa [#allocation9], 0 }
   0x7   :  { %17 = vsyncpa [#allocation7], 0  ;;  %s558_s24 = smov [#allocation8]  }
   0x8   :  { %s35_s25 = sshll.u32 %s558_s24, 4  ;;  %s36_s25 = int_to_ptr.vmem [resolvable:$true] %s35_s25 }
   0x9   :  { %s469_s26 = scalar_lea.vmem %s36_s25, 1024  ;;  %p474_p1 = scmp.lt.s32.totalorder %s36_s25, %s36_s25 }
   0xa   :  { %p470_p0 = scmp.ne.s32.totalorder %s36_s25, %s469_s26  ;;  %p475_p2 = scmp.lt.s32.totalorder %s469_s26, %s469_s26 }
   0xc   :  { %p476_p3 = por %p475_p2, %p474_p1 }
   0xe   :  { %p477_p4 = pnand %p476_p3, %p470_p0 }
  0x10   :  { %480 = shalt.err (!%p477_p4)
}
  0x11   :  { %s559_s27 = smov 64   ;;  %s560_s28 = smov 4  }
  0x12   :  { %41 = dma.hbm_to_vmem [thread:$0]  %s626_s2, 1024, %s36_s25, [#allocation9], %s559_s27, %s559_s27, %s560_s28  }
  0x13   :  { %s561_s30 = smov [#allocation5]  }
  0x14   :  { %s23_s7 = sshll.u32 %s561_s30, 4  ;;  %s24_s7 = int_to_ptr.vmem [resolvable:$true] %s23_s7 }
  0x15   :  { %s489_s8 = scalar_lea.vmem %s24_s7, 256  ;;  %p494_p6 = scmp.lt.s32.totalorder %s24_s7, %s24_s7 }
  0x16   :  { %p490_p5 = scmp.ne.s32.totalorder %s24_s7, %s489_s8  ;;  %p495_p7 = scmp.lt.s32.totalorder %s489_s8, %s489_s8 }
  0x18   :  { %p496_p8 = por %p495_p7, %p494_p6 }
  0x1a   :  { %p497_p9 = pnand %p496_p8, %p490_p5 }
  0x1c   :  { %500 = shalt.err (!%p497_p9)
}
  0x1d   :  { %s562_s9 = smov 128   ;;  %s563_s10 = smov 8  }
  0x1e   :  { %29 = dma.hbm_to_vmem [thread:$0]  %s625_s1, 256, %s24_s7, [#allocation6], %s562_s9, %s562_s9, %s563_s10  }
  0x1f   :  { %s564_s13 = smov [#allocation10]  }
  0x20   :  { %s49_s14 = sshll.u32 %s564_s13, 4  ;;  %s50_s14 = int_to_ptr.vmem [resolvable:$true] %s49_s14 }
  0x21   :  { %s509_s2 = scalar_lea.vmem %s50_s14, 1024  ;;  %p514_p11 = scmp.lt.s32.totalorder %s50_s14, %s50_s14 }
  0x22   :  { %p510_p10 = scmp.ne.s32.totalorder %s50_s14, %s509_s2  ;;  %p515_p12 = scmp.lt.s32.totalorder %s509_s2, %s509_s2 }
  0x24   :  { %p516_p13 = por %p515_p12, %p514_p11 }
  0x26   :  { %p517_p0 = pnand %p516_p13, %p510_p10 }
  0x28   :  { %520 = shalt.err (!%p517_p0)
}
  0x29   :  { %55 = dma.hbm_to_vmem [thread:$0]  %s628_s4, 1024, %s50_s14, [#allocation9], %s559_s27, %s559_s27, %s560_s28  }
  0x2a   :  { %547 = dma.done.wait [#allocation6], 256  }
  0x2b   :  { %548 = vsyncadd [#allocation6], 4294967040 }
  0x2c   :  { %549 = dma.done.wait [#allocation9], 2048  }
  0x2d   :  { %550 = vsyncadd [#allocation9], 4294965248  ;;  %s553_s17 = smov 0  }
  0x2e LB: > { %s76_s1 = sld [smem:[#allocation4 + %s555_s17]]  ;;  %s79_s19 = scalar_lea.vmem [#allocation2], %s555_s17  ;;  %s555_s17 = sphi %s553_s17, %s74_s17  }
  0x2f   : > { %s74_s17 = sadd.s32 1, %s555_s17  }
  0x30   : > { %p71_p1 = scmp.ge.s32.totalorder %s74_s17, 8  }
  0x31   :  { %v433_v1 = vld [vmem:[#allocation8 + $0x38] sm:$0xff] (%p71_p1)   ;;  %v565_v2 = vmov (%p71_p1), 0.0   ;;  %v434_v3 = vld [vmem:[#allocation8 + $0x30] sm:$0xff] (%p71_p1)   ;;  %vm566_vm0 = vmmov (%p71_p1), 0   ;;  %v435_v4 = vld [vmem:[#allocation8 + $0x28] sm:$0xff] (%p71_p1)   ;;  %s567_s23 = smov (%p71_p1), [#allocation11]  }
  0x32   :  { %73 = sbr.rel (!%p71_p1) target bundleno = 46 (0x2e), region = 61  ;;  %374 = vmatprep.subr.bf16.mxu0 (%p71_p1), %v565_v2  ;;  %394 = vmatprep.subr.bf16.mxu1 (%p71_p1), %v565_v2  ;;  %v436_v5 = vld [vmem:[#allocation8 + $0x20] sm:$0xff] (%p71_p1)   ;;  %v437_v6 = vld [vmem:[#allocation8 + $0x18] sm:$0xff] (%p71_p1)   ;;  %v438_v7 = vld [vmem:[#allocation8 + $0x10] sm:$0xff] (%p71_p1)  }
  0x33   :  { %375 = vmatpush3.bf16.msra.mxu0 (%p71_p1), %v433_v1  ;;  %390 = vmatprep.mubr.msk.bf16.mxu0 (%p71_p1), %vm566_vm0, %v565_v2  ;;  %v439_v8 = vld [vmem:[#allocation8 + $0x8] sm:$0xff] (%p71_p1)   ;;  %v440_v9 = vld [vmem:[#allocation8] sm:$0xff] (%p71_p1)   ;;  %v441_v12 = vld [vmem:[#allocation10 + $0x38] sm:$0xff] (%p71_p1)  }
  0x34   : > { %s77_s18 = scalar_lea.vmem [#allocation5], %s76_s1  ;;  %376 = vmatprep.subr.bf16.mxu0 (%p71_p1), %v565_v2  ;;  %410 = vmatprep.mubr.msk.bf16.mxu1 (%p71_p1), %vm566_vm0, %v565_v2  ;;  %v442_v13 = vld [vmem:[#allocation10 + $0x30] sm:$0xff] (%p71_p1)   ;;  %v443_v14 = vld [vmem:[#allocation10 + $0x28] sm:$0xff] (%p71_p1)   ;;  %v444_v15 = vld [vmem:[#allocation10 + $0x20] sm:$0xff] (%p71_p1)  }
  0x35   : > { %v78_v0 = vld [vmem:[%s77_s18] sm:$0x1]  ;;  %395 = vmatpush3.bf16.msra.mxu1 (%p71_p1), %v441_v12  ;;  %v445_v16 = vld [vmem:[#allocation10 + $0x18] sm:$0xff] (%p71_p1)   ;;  %v446_v17 = vld [vmem:[#allocation10 + $0x10] sm:$0xff] (%p71_p1)  }
  0x36   : > { %80 = vst [vmem:[%s79_s19] sm:$0x1] %v78_v0  ;;  %396 = vmatprep.subr.bf16.mxu1 (%p71_p1), %v565_v2  ;;  %v447_v18 = vld [vmem:[#allocation10 + $0x8] sm:$0xff] (%p71_p1)   ;;  %v448_v19 = vld [vmem:[#allocation10] sm:$0xff] (%p71_p1)  }
  0x37   :  { %377 = vmatpush3.bf16.msra.mxu0 %v434_v3  ;;  %v337_v20 = vld [vmem:[%s627_s3] ss:$0 sm:$0xff]  ;;  %s320_s3 = sshll.u32 %s567_s23, 4  ;;  %s321_s3 = int_to_ptr.vmem [resolvable:$true] %s320_s3 }
  0x38   :  { %378 = vmatprep.subr.bf16.mxu0 %v565_v2  ;;  %v347_v32 = vld [vmem:[%s629_s5] ss:$0 sm:$0xff]  ;;  %s521_s24 = scalar_lea.vmem %s321_s3, 128  ;;  %p526_p3 = scmp.lt.s32.totalorder %s321_s3, %s321_s3 }
  0x39   :  { %397 = vmatpush3.bf16.msra.mxu1 %v442_v13  ;;  %p522_p2 = scmp.ne.s32.totalorder %s321_s3, %s521_s24  ;;  %p527_p4 = scmp.lt.s32.totalorder %s521_s24, %s521_s24 }
  0x3a   :  { %398 = vmatprep.subr.bf16.mxu1 %v565_v2 }
  0x3b   :  { %379 = vmatpush3.bf16.msra.mxu0 %v435_v4  ;;  %p528_p5 = por %p527_p4, %p526_p3 }
  0x3c   :  { %380 = vmatprep.subr.bf16.mxu0 %v565_v2 }
  0x3d   :  { %v81_v10 = vld [vmem:[#allocation2] sm:$0xff]  ;;  %399 = vmatpush3.bf16.msra.mxu1 %v443_v14  ;;  %p529_p6 = pnand %p528_p5, %p522_p2 }
  0x3e   :  { %v82_v11 = vpack.c.bf16 %v81_v10, %v81_v10  ;;  %400 = vmatprep.subr.bf16.mxu1 %v565_v2 }
  0x3f   :  { %381 = vmatpush3.bf16.msra.mxu0 %v436_v5 }
  0x40   :  { %382 = vmatprep.subr.bf16.mxu0 %v565_v2 }
  0x41   :  { %401 = vmatpush3.bf16.msra.mxu1 %v444_v15 }
  0x42   :  { %402 = vmatprep.subr.bf16.mxu1 %v565_v2 }
  0x43   :  { %383 = vmatpush3.bf16.msra.mxu0 %v437_v6 }
  0x44   :  { %384 = vmatprep.subr.bf16.mxu0 %v565_v2 }
  0x45   :  { %403 = vmatpush3.bf16.msra.mxu1 %v445_v16 }
  0x46   :  { %404 = vmatprep.subr.bf16.mxu1 %v565_v2 }
  0x47   :  { %385 = vmatpush3.bf16.msra.mxu0 %v438_v7 }
  0x48   :  { %386 = vmatprep.subr.bf16.mxu0 %v565_v2 }
  0x49   :  { %405 = vmatpush3.bf16.msra.mxu1 %v446_v17 }
  0x4a   :  { %406 = vmatprep.subr.bf16.mxu1 %v565_v2 }
  0x4b   :  { %387 = vmatpush3.bf16.msra.mxu0 %v439_v8 }
  0x4c   :  { %388 = vmatprep.subr.bf16.mxu0 %v565_v2 }
  0x4d   :  { %407 = vmatpush3.bf16.msra.mxu1 %v447_v18 }
  0x4e   :  { %408 = vmatprep.subr.bf16.mxu1 %v565_v2 }
  0x4f   :  { %389 = vmatpush3.bf16.msra.mxu0 %v440_v9 }
  0x51   :  { %409 = vmatpush3.bf16.msra.mxu1 %v448_v19 }
  0x52   :  { %391 = vmatmul.mubr.bf16.vlgmr.msra.gmra.mxu0 %v82_v11 }
 0x112   :  { %v188_v21 = vpop.f32.mrf.mxu0 }
 0x113   :  { %v189_v22 = vadd.f32 %v337_v20, %v188_v21 }
 0x114   :  { %v392_v23 = vpop.f32.mrf.mxu0 }
 0x115   :  { %v346_v24 = vmul.f32 -1.442695, %v189_v22 }
 0x116   :  { %v191_v25 = vpop.f32.mrf.mxu0 }
 0x117   :  { %449 = vpow2.f32 %v346_v24 }
 0x118   :  { %v393_v26 = vpop.f32.mrf.mxu0 }
 0x124   :  { %v450_v27 = vpop.eup %449 }
 0x125   :  { %v197_v28 = vadd.f32 1.0, %v450_v27 }
 0x127   :  { %451 = vrcp.f32 %v197_v28 }
 0x134   :  { %v452_v29 = vpop.eup %451 }
 0x135   :  { %v200_v30 = vmul.f32 %v452_v29, %v189_v22 }
 0x137   :  { %v201_v31 = vpack.c.bf16 %v200_v30, %v200_v30 }
 0x139   :  { %411 = vmatmul.mubr.bf16.vlgmr.msra.gmra.mxu1 %v201_v31 }
 0x1f9   :  { %v307_v33 = vpop.f32.mrf.mxu1 }
 0x1fa   :  { %v308_v34 = vadd.f32 %v347_v32, %v307_v33 }
 0x1fb   :  { %v412_v35 = vpop.f32.mrf.mxu1 }
 0x1fc   :  { %313 = vst [vmem:[#allocation11] sm:$0xff] %v308_v34 }
 0x1fd   :  { %v310_v36 = vpop.f32.mrf.mxu1 }
 0x1fe   :  { %532 = shalt.err (!%p529_p6)
}
 0x1ff   :  { %323 = dma.vmem_to_hbm [thread:$0]  %s321_s3, 128, %s630_s6, [#allocation7]   ;;  %v413_v37 = vpop.f32.mrf.mxu1 }
 0x200   :  { %551 = dma.done.wait [#allocation7], 128  }
 0x201   :  { %552 = vsyncadd [#allocation7], 4294967168 }
 0x202   :  { %327 = vsyncpa [#allocation6], 1 }
 0x203   :  { %328 = vsyncpa [#allocation9], 1 }
 0x204   :  { %329 = vsyncpa [#allocation7], 1 }

</bundles_post_ra>
